<compile_context>
chip_gen: v5e
topology: v5e:2x2
jax: 0.10.0
libtpu: 0.0.40
codegen_flags: <defaults>
</compile_context>

<pallas_src>
import functools

import jax
import jax.numpy as jnp
from jax import lax
from jax.experimental import pallas as pl
from jax.experimental.pallas import tpu as pltpu


# --------------------------------------------------------------------------
# Preamble: L2-normalize a feature matrix, emit bf16 (consumed by the MXU).
# --------------------------------------------------------------------------
def _l2norm_bf16_kernel(x_ref, o_ref):
    x = x_ref[...].astype(jnp.float32)
    inv = lax.rsqrt(jnp.maximum(jnp.sum(x * x, axis=1, keepdims=True),
                                jnp.float32(1e-24)))
    o_ref[...] = (x * inv).astype(jnp.bfloat16)


def _l2_normalize_bf16(x, row_tile):
    n_pad, d = x.shape
    return pl.pallas_call(
        _l2norm_bf16_kernel,
        out_shape=jax.ShapeDtypeStruct((n_pad, d), jnp.bfloat16),
        grid_spec=pltpu.PrefetchScalarGridSpec(
            num_scalar_prefetch=0,
            grid=(n_pad // row_tile,),
            in_specs=[pl.BlockSpec((row_tile, d), lambda i: (i, 0))],
            out_specs=pl.BlockSpec((row_tile, d), lambda i: (i, 0)),
        ),
        compiler_params=pltpu.CompilerParams(
            dimension_semantics=("parallel",)),
    )(x)


# --------------------------------------------------------------------------
# Main kernel: one (row-tile, column-tile) block of the similarity matrix.
# --------------------------------------------------------------------------
def _infonce_kernel(v_ref, t_ref, labr_ref, labc_ref,
                    rowsum_ref, rowpos_ref, colsum_ref, colpos_ref,
                    vn_ref, *, inv_temp, n_valid):
    i = pl.program_id(0)            # row tile    ("parallel")
    j = pl.program_id(1)            # column tile ("arbitrary" / reduction)
    tm = v_ref.shape[0]
    tn = t_ref.shape[0]
    # Fixed global shift: both operands are unit-norm, so sim <= 1/T.
    # TODO(synk): switch to a per-row/column online-softmax max for very low
    # temperatures (T <~ 0.023), where exp(sim - 1/T) can underflow in f32.
    gmax = jnp.float32(inv_temp)

    @pl.when(j == 0)
    def _init():
        # Normalize this visual row tile once, fold 1/T in, keep bf16 copy.
        v = v_ref[...].astype(jnp.float32)
        inv = lax.rsqrt(jnp.maximum(jnp.sum(v * v, axis=1, keepdims=True),
                                    jnp.float32(1e-24)))
        vn_ref[...] = (v * (inv * gmax)).astype(jnp.bfloat16)
        rowsum_ref[...] = jnp.zeros_like(rowsum_ref)
        rowpos_ref[...] = jnp.zeros_like(rowpos_ref)

    # sim[r, c] = <v_r, t_c> / T -- contract dim 1 of both operands
    # (standard flash-attention Q.K^T contraction; bf16 in, f32 accumulate).
    sim = lax.dot_general(vn_ref[...], t_ref[...],
                          dimension_numbers=(((1,), (1,)), ((), ())),
                          preferred_element_type=jnp.float32)        # (tm, tn)

    row_ids = lax.broadcasted_iota(jnp.int32, (tm, tn), 0) + i * tm
    col_ids = lax.broadcasted_iota(jnp.int32, (tm, tn), 1) + j * tn
    row_valid = row_ids < n_valid
    col_valid = col_ids < n_valid

    # One shared exp pass for both softmax directions.
    p = jnp.exp(sim - gmax)                                           # (tm, tn)

    # v2t (row) direction: accumulate in the resident (tm, 1) output block.
    rowsum_ref[...] += jnp.sum(jnp.where(col_valid, p, 0.0),
                               axis=1, keepdims=True)
    rowpos_ref[...] += jnp.sum(jnp.where(col_ids == labr_ref[...], sim, 0.0),
                               axis=1, keepdims=True)

    # t2v (column) direction: per-tile partials.  Fold row groups of 8 with
    # plain VPU adds (vreg-shaped accumulator); final reduce in the wrapper.
    p_col = jnp.where(row_valid, p, 0.0)
    pos_col = jnp.where(row_ids == labc_ref[...], sim, 0.0)
    if tm % 8 == 0 and tm > 8:
        pc = p_col[0:8, :]
        qc = pos_col[0:8, :]
        for g in range(1, tm // 8):
            pc = pc + p_col[g * 8:(g + 1) * 8, :]
            qc = qc + pos_col[g * 8:(g + 1) * 8, :]
    else:
        pc, qc = p_col, pos_col
    colsum_ref[...] = pc[None]       # (1, cs_rows, tn)
    colpos_ref[...] = qc[None]


def _choose_tiles(n):
    """Return (n_pad, tm, tn): MXU/lane-aligned tiles, padding N as needed."""
    if n <= 256:
        # Single tile; full-extent blocks are always layout-legal.
        return n, n, n
    n_pad = ((n + 127) // 128) * 128
    tm = 256 if n_pad % 256 == 0 else 128        # MXU-granule row tile
    if n_pad % 512 == 0:
        tn = 512
    elif n_pad % 256 == 0:
        tn = 256
    else:
        tn = 128
    return n_pad, tm, tn


def infonce_loss(visual_features, textual_features, labels, temperature=0.07):
    n, d = visual_features.shape
    n_pad, tm, tn = _choose_tiles(n)
    inv_temp = 1.0 / float(temperature)

    labels = labels.astype(jnp.int32)
    if n_pad != n:
        pad = n_pad - n
        visual_features = jnp.pad(visual_features, ((0, pad), (0, 0)))
        textual_features = jnp.pad(textual_features, ((0, pad), (0, 0)))
        labels_row = jnp.pad(labels, (0, pad))                        # masked rows
        labels_col = jnp.pad(labels, (0, pad), constant_values=-1)    # never match
    else:
        labels_row = labels
        labels_col = labels
    labels_row = labels_row.reshape(n_pad, 1)
    labels_col = labels_col.reshape(1, n_pad)

    # Normalize textual ONCE into bf16 so only bf16 (tn, d) tiles ever enter
    # the main kernel's VMEM working set.
    textual_n = _l2_normalize_bf16(textual_features.astype(jnp.float32), tn)

    n_row_tiles = n_pad // tm
    cs_rows = 8 if tm % 8 == 0 else tm

    rowsum, rowpos, colsum, colpos = pl.pallas_call(
        functools.partial(_infonce_kernel, inv_temp=inv_temp, n_valid=n),
        out_shape=(
            jax.ShapeDtypeStruct((n_pad, 1), jnp.float32),
            jax.ShapeDtypeStruct((n_pad, 1), jnp.float32),
            jax.ShapeDtypeStruct((n_row_tiles, cs_rows, n_pad), jnp.float32),
            jax.ShapeDtypeStruct((n_row_tiles, cs_rows, n_pad), jnp.float32),
        ),
        grid_spec=pltpu.PrefetchScalarGridSpec(
            num_scalar_prefetch=0,
            grid=(n_row_tiles, n_pad // tn),
            in_specs=[
                pl.BlockSpec((tm, d), lambda i, j: (i, 0)),   # visual row tile
                pl.BlockSpec((tn, d), lambda i, j: (j, 0)),   # textual col tile
                pl.BlockSpec((tm, 1), lambda i, j: (i, 0)),   # labels, row view
                pl.BlockSpec((1, tn), lambda i, j: (0, j)),   # labels, col view
            ],
            out_specs=[
                pl.BlockSpec((tm, 1), lambda i, j: (i, 0)),            # rowsum
                pl.BlockSpec((tm, 1), lambda i, j: (i, 0)),            # rowpos
                pl.BlockSpec((1, cs_rows, tn), lambda i, j: (i, 0, j)),  # colsum
                pl.BlockSpec((1, cs_rows, tn), lambda i, j: (i, 0, j)),  # colpos
            ],
            scratch_shapes=[
                pltpu.VMEM((tm, d), jnp.bfloat16),   # normalized visual tile
            ],
        ),
        compiler_params=pltpu.CompilerParams(
            # Row tiles are fully independent (per-row-tile outputs) -> the
            # outer axis can be split across TensorCores; the inner column
            # axis carries the per-row accumulation.
            dimension_semantics=("parallel", "arbitrary"),
            vmem_limit_bytes=48 * 1024 * 1024,   # headroom-safe on v5e/v6e/v7x
        ),
    )(visual_features, textual_n, labels_row, labels_col)

    # Tiny O(N) epilogue combine (logs / means); all O(N^2) work was in-kernel.
    gmax = jnp.float32(inv_temp)
    lse_row = jnp.log(rowsum[:n, 0]) + gmax
    loss_v2t = jnp.mean(lse_row - rowpos[:n, 0])

    col_expsum = jnp.sum(colsum, axis=(0, 1))[:n]
    col_pos = jnp.sum(colpos, axis=(0, 1))[:n]
    lse_col = jnp.log(col_expsum) + gmax
    loss_t2v = jnp.mean(lse_col - col_pos)

    return (loss_v2t + loss_t2v) * 0.5


def _infonce_ref(v, t, labels, temperature=0.07):
    # Pure-JAX f32 reference for correctness checking.
    v = v / jnp.maximum(jnp.linalg.norm(v, axis=1, keepdims=True), 1e-12)
    t = t / jnp.maximum(jnp.linalg.norm(t, axis=1, keepdims=True), 1e-12)
    sim = (v @ t.T) / temperature

    def ce(logits, labels):
        logz = jax.nn.logsumexp(logits, axis=1)
        pos = jnp.take_along_axis(logits, labels[:, None], axis=1)[:, 0]
        return jnp.mean(logz - pos)

    return (ce(sim, labels) + ce(sim.T, labels)) / 2.0


if __name__ == "__main__":
    key = jax.random.PRNGKey(0)
    kv, kt = jax.random.split(key)

    N, D = 8, 32                       # batch=8, hidden=32
    visual = jax.random.normal(kv, (N, D), dtype=jnp.float32)
    textual = jax.random.normal(kt, (N, D), dtype=jnp.float32)
    labels = jnp.arange(N, dtype=jnp.int32)   # standard InfoNCE diagonal positives

    loss = infonce_loss(visual, textual, labels, temperature=0.07)
    jax.block_until_ready(loss)

    ref = _infonce_ref(visual, textual, labels, temperature=0.07)
    # Tolerance accounts for bf16 MXU inputs (f32 accumulation).
    assert jnp.allclose(loss, ref, rtol=5e-2, atol=5e-2), (loss, ref)

    print("KERNEL_OK")
</pallas_src>

<mosaic_0001>
module attributes {stable_mosaic.version = 11 : i64} {
  func.func @_l2norm_bf16_kernel(%arg0: i32, %arg1: memref<8x32xf32, #tpu.memory_space<vmem>>, %arg2: memref<8x32xbf16, #tpu.memory_space<vmem>>) attributes {dimension_semantics = [#tpu.dimension_semantics<parallel>], iteration_bounds = array<i64: 1>, scalar_prefetch = 0 : i64, scratch_operands = 0 : i64, tpu.core_type = #tpu.core_type<tc>, window_params = [{transform_indices = @transform_0, window_bounds = array<i64: 8, 32>}, {transform_indices = @transform_1, window_bounds = array<i64: 8, 32>}]} {
    %c0 = arith.constant 0 : index
    %c0_0 = arith.constant 0 : index
    %0 = vector.load %arg1[%c0, %c0_0] : memref<8x32xf32, #tpu.memory_space<vmem>>, vector<8x32xf32>
    %1 = arith.mulf %0, %0 : vector<8x32xf32>
    %cst = arith.constant dense<0.000000e+00> : vector<8xf32>
    %2 = vector.multi_reduction <add>, %1, %cst [1] : vector<8x32xf32> to vector<8xf32>
    %3 = vector.shape_cast %2 : vector<8xf32> to vector<8x1xf32>
    %cst_1 = arith.constant 1.000000e-24 : f32
    %4 = vector.broadcast %cst_1 : f32 to vector<8x1xf32>
    %5 = arith.maximumf %3, %4 : vector<8x1xf32>
    %6 = math.rsqrt %5 : vector<8x1xf32>
    %7 = vector.broadcast %6 : vector<8x1xf32> to vector<8x32xf32>
    %8 = arith.mulf %0, %7 : vector<8x32xf32>
    %9 = arith.truncf %8 : vector<8x32xf32> to vector<8x32xbf16>
    %c0_2 = arith.constant 0 : index
    %c0_3 = arith.constant 0 : index
    %10 = vector.load %arg2[%c0_2, %c0_3] : memref<8x32xbf16, #tpu.memory_space<vmem>>, vector<8x32xbf16>
    tpu.vector_store %arg2[%c0_2, %c0_3], %9 {strides = array<i32>} : memref<8x32xbf16, #tpu.memory_space<vmem>>, vector<8x32xbf16>,
    return
  }
  func.func @transform_0(%arg0: i32) -> (i32, i32) {
    %c0_i32 = arith.constant 0 : i32
    %c0_i32_0 = arith.constant 0 : i32
    return %arg0, %c0_i32 : i32, i32
  }
  func.func @transform_1(%arg0: i32) -> (i32, i32) {
    %c0_i32 = arith.constant 0 : i32
    %c0_i32_0 = arith.constant 0 : i32
    return %arg0, %c0_i32 : i32, i32
  }
}

</mosaic_0001>

<bundles_post_ra>
// kernel: tpu_custom_call.1
= control target key start
LH: loop header
LB: loop body
LE: loop exit
PB: predicated region body
PF: predicated region fallthrough
CT: control target
= control target key end

     0   :  { %6 = vsyncpa [#allocation3], 0  ;;  %s135_s0 = inlined_call_operand.hbm [shape: f32[8,32], index: 0, kind: input, shape index: {}]   ;;  %s136_s1 = inlined_call_operand.hbm [shape: bf16[8,32], index: 1, kind: output, shape index: {}]  }
   0x1   :  { %7 = vsyncpa [#allocation4], 0  ;;  %s13_s8 = sshll.u32 %s135_s0, 4  ;;  %s117_s9 = smov [#allocation2]   ;;  %s14_s8 = int_to_ptr.hbm [resolvable:$true] %s13_s8 }
   0x2   :  { %s15_s10 = sshll.u32 %s117_s9, 4  ;;  %s16_s10 = int_to_ptr.vmem [resolvable:$true] %s15_s10 }
   0x3   :  { %18 = dma.hbm_to_vmem [thread:$0]  %s14_s8, 128, %s16_s10, [#allocation3]  }
   0x4   :  { %113 = dma.done.wait [#allocation3], 128  }
   0x5   :  { %114 = vsyncadd [#allocation3], 4294967168  ;;  %v23_v0 = vld [vmem:[#allocation2] sm:$0xff]  ;;  %vm25_vm0 = vcmask 261120   ;;  %s118_s0 = smov [#allocation5]   ;;  %s51_s14 = sshll.u32 %s136_s1, 4  ;;  %s52_s14 = int_to_ptr.hbm [resolvable:$true] %s51_s14 }
   0x6   :  { %v24_v1 = vmul.f32 %v23_v0, %v23_v0  ;;  %s49_s11 = sshll.u32 %s118_s0, 4  ;;  %vm42_vm4 = vcmask 257024   ;;  %s50_s11 = int_to_ptr.vmem [resolvable:$true] %s49_s11 }
   0x8   :  { %v26_v2 = vsel %vm25_vm0, %v24_v1, 0.0 }
   0x9   :  { %27 = vadd.xlane.f32.xlu0 %v26_v2 }
  0x7c   :  { %v28_v3 = vpop.xlane.xlu0 %27 }
  0x7d   :  { %v29_v4 = vmax.f32 %v28_v3, 1e-24 }
  0x7f   :  { %63 = vrsqrt.f32 %v29_v4  ;;  %vm36_vm2 = vweird.f32 %v29_v4 }
  0x85   :  { %v64_v5 = vpop.eup %63 }
  0x86   :  { %v31_v6 = vmul.f32 %v64_v5, %v29_v4  ;;  %vm37_vm1 = vweird.f32 %v64_v5 }
  0x87   :  { %vm38_vm3 = vmor %vm36_vm2, %vm37_vm1 }
  0x88   :  { %v32_v7 = vmul.f32 %v64_v5, %v31_v6 }
  0x8a   :  { %v33_v8 = vmul.f32 0.5, %v32_v7 }
  0x8c   :  { %v34_v9 = vsub.f32 1.5, %v33_v8 }
  0x8e   :  { %v35_v10 = vmul.f32 %v64_v5, %v34_v9 }
  0x90   :  { %v39_v11 = vsel %vm38_vm3, %v64_v5, %v35_v10 }
  0x91   :  { %v40_v12 = vmul.f32 %v39_v11, %v23_v0 }
  0x93   :  { %v41_v13 = vpack.c.bf16 %v40_v12, %v40_v12 }
  0x95   :  { %43 = vst.msk [vmem:[#allocation5] sm:$0xf] %vm42_vm4, %v41_v13 }
  0x96   :  { %54 = dma.vmem_to_hbm [thread:$0]  %s50_s11, 64, %s52_s14, [#allocation4]  }
  0x97   :  { %115 = dma.done.wait [#allocation4], 64  }
  0x98   :  { %116 = vsyncadd [#allocation4], 4294967232 }
  0x99   :  { %59 = vsyncpa [#allocation3], 1 }
  0x9a   :  { %60 = vsyncpa [#allocation4], 1 }

</bundles_post_ra>
